<compile_context>
chip_gen: v6e
topology: v6e:2x2x1
jax: 0.10.0
libtpu: 0.0.40
codegen_flags: <defaults>
</compile_context>

<pallas_src>
import functools
import math

import jax
import jax.numpy as jnp
from jax import lax
from jax.experimental import pallas as pl
from jax.experimental.pallas import tpu as pltpu

ALPHA = 0.154  # module default


def _round_up(x, m):
    return (x + m - 1) // m * m


def _smoothed_ce_kernel(logits_ref, targets_ref, nll_ref, m_ref, s_ref, t_ref,
                        *, log_scale):
    # logits_ref : [TB, TC] native dtype        targets_ref : [TB, 1] int32
    # nll_ref    : [1, 1, TB] f32 (lane-dense per-sample -log(out))
    # m_ref/s_ref/t_ref : [TB, 1] f32 scratch (running max / sum-exp / target logit)
    k = pl.program_id(1)
    nk = pl.num_programs(1)
    tb, tc = logits_ref.shape

    @pl.when(k == 0)
    def _init():
        m_ref[...] = jnp.full_like(m_ref, -jnp.inf)
        s_ref[...] = jnp.zeros_like(s_ref)
        t_ref[...] = jnp.zeros_like(t_ref)

    x = logits_ref[...].astype(jnp.float32)                       # [TB, TC]

    # --- online logsumexp over the class axis ---
    m_prev = m_ref[...]
    m_new = jnp.maximum(m_prev, jnp.max(x, axis=-1, keepdims=True))
    s_ref[...] = (s_ref[...] * jnp.exp(m_prev - m_new)
                  + jnp.sum(jnp.exp(x - m_new), axis=-1, keepdims=True))
    m_ref[...] = m_new

    # --- accumulate the raw logit at the target column ---
    # (nonzero contribution comes from exactly one class tile; no full logp tensor)
    tgt = targets_ref[...]                                        # [TB, 1] int32
    cols = lax.broadcasted_iota(jnp.int32, (tb, tc), 1) + k * tc
    t_ref[...] += jnp.sum(jnp.where(cols == tgt, x, 0.0), axis=-1, keepdims=True)

    @pl.when(k == nk - 1)
    def _finalize():
        # -log(p_target * scale) = m + log(sum exp(x - m)) - x_target - log(scale)
        nll_col = m_ref[...] + jnp.log(s_ref[...]) - t_ref[...] - log_scale  # [TB, 1]
        # relayout [TB, 1] -> [1, TB] (lane-dense store) via a masked sublane reduce
        r = lax.broadcasted_iota(jnp.int32, (tb, tb), 0)
        c = lax.broadcasted_iota(jnp.int32, (tb, tb), 1)
        nll_row = jnp.sum(jnp.where(r == c, nll_col, 0.0), axis=0, keepdims=True)
        nll_ref[...] = nll_row.reshape(1, 1, tb)


def smoothed_cross_entropy_loss(logits, targets, alpha=ALPHA, reduce=True,
                                tb=None, tc=None):
    """logits: [B, C] (f32 or bf16), targets: [B] int. Scalar (reduce) or [B]."""
    B, C = logits.shape
    targets2d = targets.astype(jnp.int32).reshape(B, 1)

    # dtype-aware sublane alignment for the batch-tile dim (f32:8, bf16:16, int8:32)
    itemsize = jnp.dtype(logits.dtype).itemsize
    sub = {4: 8, 2: 16, 1: 32}.get(itemsize, 8)

    if tb is None:
        tb = 256 if B >= 256 else _round_up(B, sub)
    tb = _round_up(tb, sub)
    if tc is None:
        tc = 2048 if C >= 2048 else _round_up(C, 128)
    tc = _round_up(tc, 128)

    b_pad = _round_up(B, tb)
    c_pad = _round_up(C, tc)
    nb, nc = b_pad // tb, c_pad // tc

    if (b_pad, c_pad) != (B, C):
        # huge-negative padding -> exp() underflows to 0, never selected by max
        neg = jnp.finfo(logits.dtype).min
        logits = jnp.pad(logits, ((0, b_pad - B), (0, c_pad - C)),
                         constant_values=neg)
        targets2d = jnp.pad(targets2d, ((0, b_pad - B), (0, 0)))

    log_scale = math.log(1.0 - alpha + alpha / float(C))
    kernel = functools.partial(_smoothed_ce_kernel, log_scale=log_scale)

    nll = pl.pallas_call(
        kernel,
        out_shape=jax.ShapeDtypeStruct((nb, 1, tb), jnp.float32),
        grid_spec=pltpu.PrefetchScalarGridSpec(
            num_scalar_prefetch=0,
            grid=(nb, nc),                       # batch tiles, class (reduction) tiles
            in_specs=[
                pl.BlockSpec((tb, tc), lambda i, k: (i, k)),   # logits tile
                pl.BlockSpec((tb, 1), lambda i, k: (i, 0)),    # targets (same block across k)
            ],
            out_specs=pl.BlockSpec((1, 1, tb), lambda i, k: (i, 0, 0)),
            scratch_shapes=[
                pltpu.VMEM((tb, 1), jnp.float32),   # running max
                pltpu.VMEM((tb, 1), jnp.float32),   # running sum-exp
                pltpu.VMEM((tb, 1), jnp.float32),   # target logit
            ],
        ),
        compiler_params=pltpu.CompilerParams(
            dimension_semantics=("parallel", "arbitrary"),
            vmem_limit_bytes=32 * 1024 * 1024,
        ),
    )(logits, targets2d)

    nll = nll.reshape(b_pad)[:B]                 # drop batch padding
    return jnp.mean(nll) if reduce else nll


def _reference(logits, targets, alpha=ALPHA, reduce=True):
    # pure-JAX reference of the PyTorch forward
    C = logits.shape[-1]
    p = jax.nn.softmax(logits.astype(jnp.float32), axis=1)
    picked = p[jnp.arange(logits.shape[0]), targets]
    out = picked * (1.0 - alpha + alpha / float(C))
    return -jnp.mean(jnp.log(out)) if reduce else -jnp.log(out)


if __name__ == "__main__":
    key = jax.random.PRNGKey(0)

    # --- test 1: small f32, single-tile grid ---
    B, C = 8, 32
    k1, k2 = jax.random.split(key)
    logits = jax.random.normal(k1, (B, C), dtype=jnp.float32)
    targets = jax.random.randint(k2, (B,), 0, C, dtype=jnp.int32)

    loss = jax.block_until_ready(smoothed_cross_entropy_loss(logits, targets, reduce=True))
    ref = _reference(logits, targets, reduce=True)
    assert jnp.allclose(loss, ref, atol=1e-5, rtol=1e-5), (loss, ref)

    nll = jax.block_until_ready(smoothed_cross_entropy_loss(logits, targets, reduce=False))
    ref_nll = _reference(logits, targets, reduce=False)
    assert jnp.allclose(nll, ref_nll, atol=1e-5, rtol=1e-5), (nll, ref_nll)

    # --- test 2: bf16 input, multi-tile grid exercising the online-LSE path ---
    B2, C2 = 24, 512
    k3, k4 = jax.random.split(k2)
    logits2 = jax.random.normal(k3, (B2, C2), dtype=jnp.float32).astype(jnp.bfloat16)
    targets2 = jax.random.randint(k4, (B2,), 0, C2, dtype=jnp.int32)

    nll2 = jax.block_until_ready(
        smoothed_cross_entropy_loss(logits2, targets2, reduce=False, tb=16, tc=128))
    ref2 = _reference(logits2.astype(jnp.float32), targets2, reduce=False)
    assert jnp.allclose(nll2, ref2, atol=1e-4, rtol=1e-4), (nll2, ref2)

    print("KERNEL_OK")
</pallas_src>

<mosaic_0001>
module attributes {stable_mosaic.version = 11 : i64} {
  func.func @_smoothed_ce_kernel(%arg0: i32, %arg1: i32, %arg2: memref<8x128xf32, #tpu.memory_space<vmem>>, %arg3: memref<8x1xi32, #tpu.memory_space<vmem>>, %arg4: memref<1x1x8xf32, #tpu.memory_space<vmem>>, %arg5: memref<8x1xf32, #tpu.memory_space<vmem>>, %arg6: memref<8x1xf32, #tpu.memory_space<vmem>>, %arg7: memref<8x1xf32, #tpu.memory_space<vmem>>) attributes {dimension_semantics = [#tpu.dimension_semantics<parallel>, #tpu.dimension_semantics<arbitrary>], iteration_bounds = array<i64: 1, 1>, scalar_prefetch = 0 : i64, scratch_operands = 3 : i64, tpu.core_type = #tpu.core_type<tc>, window_params = [{transform_indices = @transform_0, window_bounds = array<i64: 8, 128>}, {transform_indices = @transform_1, window_bounds = array<i64: 8, 1>}, {transform_indices = @transform_2, window_bounds = array<i64: 1, 1, 8>}]} {
    %c0_i32 = arith.constant 0 : i32
    %0 = arith.cmpi eq, %arg1, %c0_i32 : i32
    %1 = arith.extui %0 : i1 to i32
    %c0_i32_0 = arith.constant 0 : i32
    %2 = arith.cmpi ne, %1, %c0_i32_0 : i32
    scf.if %2 {
      %cst_21 = arith.constant 0xFF800000 : f32
      %37 = vector.broadcast %cst_21 : f32 to vector<8x1xf32>
      %c0_22 = arith.constant 0 : index
      %c0_23 = arith.constant 0 : index
      %38 = vector.load %arg5[%c0_22, %c0_23] : memref<8x1xf32, #tpu.memory_space<vmem>>, vector<8x1xf32>
      tpu.vector_store %arg5[%c0_22, %c0_23], %37 {strides = array<i32>} : memref<8x1xf32, #tpu.memory_space<vmem>>, vector<8x1xf32>,
      %cst_24 = arith.constant 0.000000e+00 : f32
      %39 = vector.broadcast %cst_24 : f32 to vector<8x1xf32>
      %c0_25 = arith.constant 0 : index
      %c0_26 = arith.constant 0 : index
      %40 = vector.load %arg6[%c0_25, %c0_26] : memref<8x1xf32, #tpu.memory_space<vmem>>, vector<8x1xf32>
      tpu.vector_store %arg6[%c0_25, %c0_26], %39 {strides = array<i32>} : memref<8x1xf32, #tpu.memory_space<vmem>>, vector<8x1xf32>,
      %cst_27 = arith.constant 0.000000e+00 : f32
      %41 = vector.broadcast %cst_27 : f32 to vector<8x1xf32>
      %c0_28 = arith.constant 0 : index
      %c0_29 = arith.constant 0 : index
      %42 = vector.load %arg7[%c0_28, %c0_29] : memref<8x1xf32, #tpu.memory_space<vmem>>, vector<8x1xf32>
      tpu.vector_store %arg7[%c0_28, %c0_29], %41 {strides = array<i32>} : memref<8x1xf32, #tpu.memory_space<vmem>>, vector<8x1xf32>,
    } else {
    }
    %c0 = arith.constant 0 : index
    %c0_1 = arith.constant 0 : index
    %3 = vector.load %arg2[%c0, %c0_1] : memref<8x128xf32, #tpu.memory_space<vmem>>, vector<8x128xf32>
    %c0_2 = arith.constant 0 : index
    %c0_3 = arith.constant 0 : index
    %4 = vector.load %arg5[%c0_2, %c0_3] : memref<8x1xf32, #tpu.memory_space<vmem>>, vector<8x1xf32>
    %cst = arith.constant dense<0xFF800000> : vector<8xf32>
    %5 = vector.multi_reduction <maximumf>, %3, %cst [1] : vector<8x128xf32> to vector<8xf32>
    %6 = vector.shape_cast %5 : vector<8xf32> to vector<8x1xf32>
    %7 = arith.maximumf %4, %6 : vector<8x1xf32>
    %c0_4 = arith.constant 0 : index
    %c0_5 = arith.constant 0 : index
    %8 = vector.load %arg6[%c0_4, %c0_5] : memref<8x1xf32, #tpu.memory_space<vmem>>, vector<8x1xf32>
    %9 = arith.subf %4, %7 : vector<8x1xf32>
    %10 = math.exp %9 : vector<8x1xf32>
    %11 = arith.mulf %8, %10 : vector<8x1xf32>
    %12 = vector.broadcast %7 : vector<8x1xf32> to vector<8x128xf32>
    %13 = arith.subf %3, %12 : vector<8x128xf32>
    %14 = math.exp %13 : vector<8x128xf32>
    %cst_6 = arith.constant dense<0.000000e+00> : vector<8xf32>
    %15 = vector.multi_reduction <add>, %14, %cst_6 [1] : vector<8x128xf32> to vector<8xf32>
    %16 = vector.shape_cast %15 : vector<8xf32> to vector<8x1xf32>
    %17 = arith.addf %11, %16 : vector<8x1xf32>
    %c0_7 = arith.constant 0 : index
    %c0_8 = arith.constant 0 : index
    %18 = vector.load %arg6[%c0_7, %c0_8] : memref<8x1xf32, #tpu.memory_space<vmem>>, vector<8x1xf32>
    tpu.vector_store %arg6[%c0_7, %c0_8], %17 {strides = array<i32>} : memref<8x1xf32, #tpu.memory_space<vmem>>, vector<8x1xf32>,
    %c0_9 = arith.constant 0 : index
    %c0_10 = arith.constant 0 : index
    %19 = vector.load %arg5[%c0_9, %c0_10] : memref<8x1xf32, #tpu.memory_space<vmem>>, vector<8x1xf32>
    tpu.vector_store %arg5[%c0_9, %c0_10], %7 {strides = array<i32>} : memref<8x1xf32, #tpu.memory_space<vmem>>, vector<8x1xf32>,
    %c0_11 = arith.constant 0 : index
    %c0_12 = arith.constant 0 : index
    %20 = vector.load %arg3[%c0_11, %c0_12] : memref<8x1xi32, #tpu.memory_space<vmem>>, vector<8x1xi32>
    %21 = tpu.iota {dimensions = array<i32: 1>} : vector<8x128xi32>
    %c128_i32 = arith.constant 128 : i32
    %22 = arith.muli %arg1, %c128_i32 : i32
    %23 = vector.broadcast %22 : i32 to vector<8x128xi32>
    %24 = arith.addi %21, %23 : vector<8x128xi32>
    %c0_13 = arith.constant 0 : index
    %c0_14 = arith.constant 0 : index
    %25 = vector.load %arg7[%c0_13, %c0_14] : memref<8x1xf32, #tpu.memory_space<vmem>>, vector<8x1xf32>
    %26 = vector.broadcast %20 : vector<8x1xi32> to vector<8x128xi32>
    %27 = arith.cmpi eq, %24, %26 : vector<8x128xi32>
    %cst_15 = arith.constant 0.000000e+00 : f32
    %28 = vector.broadcast %cst_15 : f32 to vector<8x128xf32>
    %29 = arith.select %27, %3, %28 : vector<8x128xi1>, vector<8x128xf32>
    %cst_16 = arith.constant dense<0.000000e+00> : vector<8xf32>
    %30 = vector.multi_reduction <add>, %29, %cst_16 [1] : vector<8x128xf32> to vector<8xf32>
    %31 = vector.shape_cast %30 : vector<8xf32> to vector<8x1xf32>
    %32 = arith.addf %25, %31 : vector<8x1xf32>
    %c0_17 = arith.constant 0 : index
    %c0_18 = arith.constant 0 : index
    %33 = vector.load %arg7[%c0_17, %c0_18] : memref<8x1xf32, #tpu.memory_space<vmem>>, vector<8x1xf32>
    tpu.vector_store %arg7[%c0_17, %c0_18], %32 {strides = array<i32>} : memref<8x1xf32, #tpu.memory_space<vmem>>, vector<8x1xf32>,
    %c0_i32_19 = arith.constant 0 : i32
    %34 = arith.cmpi eq, %arg1, %c0_i32_19 : i32
    %35 = arith.extui %34 : i1 to i32
    %c0_i32_20 = arith.constant 0 : i32
    %36 = arith.cmpi ne, %35, %c0_i32_20 : i32
    scf.if %36 {
      %c0_21 = arith.constant 0 : index
      %c0_22 = arith.constant 0 : index
      %37 = vector.load %arg5[%c0_21, %c0_22] : memref<8x1xf32, #tpu.memory_space<vmem>>, vector<8x1xf32>
      %c0_23 = arith.constant 0 : index
      %c0_24 = arith.constant 0 : index
      %38 = vector.load %arg6[%c0_23, %c0_24] : memref<8x1xf32, #tpu.memory_space<vmem>>, vector<8x1xf32>
      %39 = math.log %38 : vector<8x1xf32>
      %40 = arith.addf %37, %39 : vector<8x1xf32>
      %c0_25 = arith.constant 0 : index
      %c0_26 = arith.constant 0 : index
      %41 = vector.load %arg7[%c0_25, %c0_26] : memref<8x1xf32, #tpu.memory_space<vmem>>, vector<8x1xf32>
      %42 = arith.subf %40, %41 : vector<8x1xf32>
      %cst_27 = arith.constant -0.161563501 : f32
      %43 = vector.broadcast %cst_27 : f32 to vector<8x1xf32>
      %44 = arith.subf %42, %43 : vector<8x1xf32>
      %45 = tpu.iota {dimensions = array<i32: 0>} : vector<8x8xi32>
      %46 = tpu.iota {dimensions = array<i32: 1>} : vector<8x8xi32>
      %47 = arith.cmpi eq, %45, %46 : vector<8x8xi32>
      %cst_28 = arith.constant 0.000000e+00 : f32
      %48 = vector.shape_cast %44 : vector<8x1xf32> to vector<8x1xf32>
      %49 = vector.broadcast %48 : vector<8x1xf32> to vector<8x8xf32>
      %50 = vector.broadcast %cst_28 : f32 to vector<8x8xf32>
      %51 = arith.select %47, %49, %50 : vector<8x8xi1>, vector<8x8xf32>
      %cst_29 = arith.constant dense<0.000000e+00> : vector<8xf32>
      %52 = vector.multi_reduction <add>, %51, %cst_29 [0] : vector<8x8xf32> to vector<8xf32>
      %53 = vector.shape_cast %52 : vector<8xf32> to vector<1x8xf32>
      %54 = vector.shape_cast %53 : vector<1x8xf32> to vector<1x1x8xf32>
      %c0_30 = arith.constant 0 : index
      %c0_31 = arith.constant 0 : index
      %c0_32 = arith.constant 0 : index
      %55 = vector.load %arg4[%c0_30, %c0_31, %c0_32] : memref<1x1x8xf32, #tpu.memory_space<vmem>>, vector<1x1x8xf32>
      tpu.vector_store %arg4[%c0_30, %c0_31, %c0_32], %54 {strides = array<i32>} : memref<1x1x8xf32, #tpu.memory_space<vmem>>, vector<1x1x8xf32>,
    } else {
    }
    return
  }
  func.func @transform_0(%arg0: i32, %arg1: i32) -> (i32, i32) {
    %c0_i32 = arith.constant 0 : i32
    return %arg0, %arg1 : i32, i32
  }
  func.func @transform_1(%arg0: i32, %arg1: i32) -> (i32, i32) {
    %c0_i32 = arith.constant 0 : i32
    %c0_i32_0 = arith.constant 0 : i32
    return %arg0, %c0_i32 : i32, i32
  }
  func.func @transform_2(%arg0: i32, %arg1: i32) -> (i32, i32, i32) {
    %c0_i32 = arith.constant 0 : i32
    %c0_i32_0 = arith.constant 0 : i32
    %c0_i32_1 = arith.constant 0 : i32
    return %arg0, %c0_i32, %c0_i32_0 : i32, i32, i32
  }
}

</mosaic_0001>

<bundles_post_ra>
// kernel: tpu_custom_call.1
= control target key start
LH: loop header
LB: loop body
LE: loop exit
PB: predicated region body
PF: predicated region fallthrough
CT: control target
= control target key end

     0   :  { %s173_s0 = inlined_call_operand.vmem [shape: f32[8,128], index: 0, kind: input, shape index: {}]   ;;  %s174_s1 = inlined_call_operand.vmem [shape: s32[8,1], index: 1, kind: input, shape index: {}]   ;;  %s175_s2 = inlined_call_operand.hbm [shape: f32[1,1,8], index: 2, kind: output, shape index: {}]  }
   0x1   :  { %v20_v0 = vld [vmem:[%s173_s0] sm:$0xff] }
   0x2   :  { %7 = vsyncpa [#allocation6], 0  ;;  %22 = vmax.xlane.f32.xlu0 %v20_v0  ;;  %vm16_vm0 = vcmask 7168   ;;  %v139_v1 = vmov -inf   ;;  %v140_v2 = vmov 0   ;;  %v44_v3 = vld [vmem:[%s174_s1] sm:$0xff]  ;;  %v45_v12 = vlaneseq }
   0x3   :  { %17 = vst.msk [vmem:[#allocation2] sm:$0xff] %vm16_vm0, %v139_v1  ;;  %109 = vset.pattern.permute.xlu0 %v140_v2  ;;  %110 = vset.pattern.permute.xlu1 %v140_v2  ;;  %v141_v4 = vmov 0.0   ;;  %vm80_vm3 = vcmask 64512   ;;  %s142_s0 = smov [#allocation5]   ;;  %vm88_vm4 = vcmask 57344  }
   0x4   :  { %52 = vperm.xlu1 %110, %v44_v3   ;;  %18 = vst.msk [vmem:[#allocation3] sm:$0xff] %vm16_vm0, %v141_v4  ;;  %19 = vst.msk [vmem:[#allocation4] sm:$0xff] %vm16_vm0, %v141_v4  ;;  %v46_v13 = vand.u32 127, %v45_v12  ;;  %v72_v34 = vshrl.u32 %v45_v12, 7  ;;  %s96_s1 = sshll.u32 %s142_s0, 4  ;;  %s97_s1 = int_to_ptr.vmem [resolvable:$true] %s96_s1 }
   0x5   :  { %s117_s13 = scalar_lea.vmem %s97_s1, 16  ;;  %s121_s14 = scalar_lea.vmem %s97_s1, 32 }
   0x6   :  { %vm73_vm2 = vcmp.eq.s32.totalorder %v72_v34, %v46_v13  ;;  %p118_p0 = scmp.ne.s32.totalorder %s97_s1, %s117_s13  ;;  %p122_p1 = scmp.lt.s32.totalorder %s97_s1, %s97_s1 }
   0x7   :  { %p123_p2 = scmp.lt.s32.totalorder %s121_s14, %s117_s13 }
   0x9   :  { %p124_p3 = por %p123_p2, %p122_p1 }
   0xa   :  { %v21_v5 = vld [vmem:[#allocation2] sm:$0xff] }
   0xb   :  { %v25_v19 = vld [vmem:[#allocation3] sm:$0xff]  ;;  %v50_v23 = vld [vmem:[#allocation4] sm:$0xff]  ;;  %p125_p4 = pnand %p124_p3, %p118_p0 }
  0x7f   :  { %v53_v14 = vpop.permute.xlu1 %52 }
  0x80   :  { %vm54_vm1 = vcmp.eq.s32.totalorder %v46_v13, %v53_v14 }
  0x81   :  { %v55_v16 = vsel %vm54_vm1, %v20_v0, 0.0 }
  0x8b   :  { %v23_v6 = vpop.xlane.xlu0 %22 }
  0x8c   :  { %v24_v7 = vmax.f32 %v21_v5, %v23_v6 }
  0x8e   :  { %v26_v8 = vsub.f32 %v21_v5, %v24_v7  ;;  %43 = vst.msk [vmem:[#allocation2] sm:$0xff] %vm16_vm0, %v24_v7  ;;  %32 = vperm.xlu0 %109, %v24_v7  }
  0x90   :  { %v27_v17 = vmul.f32 1.442695, %v26_v8 }
  0x95   :  { %v63_v29 = vld [vmem:[#allocation2] sm:$0xff] }
 0x109   :  { %v33_v9 = vpop.permute.xlu0 %32 }
 0x10a   :  { %v35_v10 = vsub.f32 %v20_v0, %v33_v9 }
 0x10c   :  { %v36_v11 = vmul.f32 1.442695, %v35_v10 }
 0x10e   :  { %111 = vpow2.f32 %v36_v11 }
 0x10f   :  { %113 = vpow2.f32 %v27_v17 }
 0x11b   :  { %v112_v15 = vpop.eup %111 }
 0x11c   :  { %38 = vadd.xlane.f32.xlu1 %v112_v15  ;;  %v114_v18 = vpop.eup %113 }
 0x11d   :  { %v29_v20 = vmul.f32 %v114_v18, %v25_v19 }
 0x120   :  { %56 = vadd.xlane.f32.xlu1 %v55_v16 }
 0x1a5   :  { %v39_v21 = vpop.xlane.xlu1 %38 }
 0x1a6   :  { %v40_v22 = vadd.f32 %v39_v21, %v29_v20 }
 0x1a8   :  { %42 = vst.msk [vmem:[#allocation3] sm:$0xff] %vm16_vm0, %v40_v22 }
 0x1a9   :  { %v57_v24 = vpop.xlane.xlu1 %56 }
 0x1aa   :  { %v58_v25 = vadd.f32 %v57_v24, %v50_v23 }
 0x1ac   :  { %59 = vst.msk [vmem:[#allocation4] sm:$0xff] %vm16_vm0, %v58_v25 }
 0x1af   :  { %v64_v26 = vld [vmem:[#allocation3] sm:$0xff] }
 0x1b0   :  { %115 = vlog2.f32 %v64_v26 }
 0x1b3   :  { %v68_v30 = vld [vmem:[#allocation4] sm:$0xff] }
 0x1bd   :  { %v116_v27 = vpop.eup %115 }
 0x1be   :  { %v66_v28 = vmul.f32 0.6931472, %v116_v27 }
 0x1c0   :  { %v67_v31 = vadd.f32 %v66_v28, %v63_v29 }
 0x1c2   :  { %v69_v32 = vsub.f32 %v67_v31, %v68_v30 }
 0x1c4   :  { %v104_v33 = vadd.f32 0.1615635, %v69_v32 }
 0x1c6   :  { %76 = vperm.xlu1 %110, %v104_v33  }
 0x241   :  { %v77_v35 = vpop.permute.xlu1 %76 }
 0x242   :  { %v79_v36 = vsel %vm73_vm2, %v77_v35, 0.0 }
 0x243   :  { %v81_v37 = vsel %vm80_vm3, %v79_v36, 0.0 }
 0x244   :  { %v82_v38 = vrot.slane %v81_v37, 4 }
 0x246   :  { %v83_v39 = vadd.f32 %v82_v38, %v81_v37 }
 0x248   :  { %v84_v40 = vrot.slane %v83_v39, 2 }
 0x24a   :  { %v85_v41 = vadd.f32 %v84_v40, %v83_v39 }
 0x24c   :  { %v86_v42 = vrot.slane %v85_v41, 1 }
 0x24e   :  { %v87_v43 = vadd.f32 %v86_v42, %v85_v41 }
 0x250   :  { %89 = vst.msk [vmem:[#allocation5] sm:$0x1] %vm88_vm4, %v87_v43 }
 0x251   :  { %128 = shalt.err (!%p125_p4)
}
 0x252   :  { %99 = dma.vmem_to_hbm [thread:$0]  %s97_s1, 16, %s175_s2, [#allocation6]  }
 0x253   :  { %137 = dma.done.wait [#allocation6], 16  }
 0x254   :  { %138 = vsyncadd [#allocation6], 4294967280 }
 0x255   :  { %103 = vsyncpa [#allocation6], 1 }

</bundles_post_ra>
